<compile_context>
chip_gen: v5e
topology: v5e:2x2
jax: 0.10.0
libtpu: 0.0.40
codegen_flags: <defaults>
</compile_context>

<pallas_src>
from functools import partial

import jax
import jax.numpy as jnp
from jax.experimental import pallas as pl
from jax.experimental.pallas import tpu as pltpu


def _round_up(x: int, m: int) -> int:
    return (x + m - 1) // m * m


def _pick_batch_block(n: int, bytes_per_image: int, target_bytes: int = 1 << 20) -> int:
    """Largest divisor Nb of n with Nb*bytes <= target and grid length >= 2 (if n >= 2)."""
    best = 1
    for nb in range(1, n + 1):
        if n % nb != 0:
            continue
        if nb * bytes_per_image > target_bytes:
            break
        if n // nb >= 2 or n == 1:
            best = nb
    return best


def convblock_kernel(x_ref, w_ref, scale_ref, shift_ref, o_ref, col_ref, *, alpha, H, W):
    """Fused 3x3 conv (stride 1, pad 1) + eval-mode BN + paGLU for Nb images.

    x_ref:     (Nb, Cin_pad, L_in)   bf16  zero-padded CHW images, rows flattened
    w_ref:     (C2, 9*Cin_pad)       bf16  conv weights packed as one K-matrix
    scale_ref: (C2, 1)               f32   gamma / sqrt(var + eps)
    shift_ref: (C2, 1)               f32   (conv_bias - mean) * scale + beta
    o_ref:     (Nb, Cout, Lout)      bf16  Lout = H*(W+2); 2 garbage cols/row
    col_ref:   (9*Cin_pad, Lout)     bf16  im2col scratch (matmul RHS)
    """
    Nb = x_ref.shape[0]
    Cin = x_ref.shape[1]
    C2 = w_ref.shape[0]
    Cout = C2 // 2
    Wp = W + 2
    Lout = H * Wp

    for nb in range(Nb):
        # im2col: each tap is a contiguous lane-offset slice of the flattened
        # padded image (boundary columns come out as garbage, dropped later).
        for t in range(9):
            dy, dx = t // 3, t % 3
            off = dy * Wp + dx
            col_ref[t * Cin:(t + 1) * Cin, :] = x_ref[nb, :, off:off + Lout]

        # Single fused matmul: (C2, 9*Cin) x (9*Cin, Lout), f32 accumulation.
        acc = jnp.dot(w_ref[...], col_ref[...], preferred_element_type=jnp.float32)

        # Eval-mode BatchNorm (scale applied in f32, not folded into bf16 weights).
        y = acc * scale_ref[...] + shift_ref[...]

        v = y[:Cout, :]                                   # value half
        g = y[Cout:, :]                                   # gate half
        gate = (1.0 - alpha) + alpha * jax.nn.sigmoid(g)  # paGLU, alpha static
        o_ref[nb] = (v * gate).astype(o_ref.dtype)        # lane-dense bf16 store


def conv_block_forward(x_nchw, w_oihw, b, gamma, beta, run_mean, run_var,
                       *, alpha=0.5, eps=1e-5):
    """NCHW in / NCHW out (float32), parameters in PyTorch layouts (eval-mode BN)."""
    N, Cin, H, W = x_nchw.shape
    C2 = w_oihw.shape[0]               # = 2 * out_channels
    Cout = C2 // 2
    Wp = W + 2
    Lout = H * Wp                      # output pixels incl. 2 garbage cols/row
    Lp = (H + 2) * Wp                  # flattened padded-image length
    Cin_pad = _round_up(Cin, 8)        # keep sublane offsets clean for bf16
    # taps read up to offset 2*Wp+2 past the last output pixel -> pad the lanes.
    L_in = _round_up(Lp + 2 * Wp + 2 - H * Wp + Lout, 128)
    L_in = max(L_in, _round_up(Lp + 2, 128))

    # ---- parameter packing (plain JAX, runs once under jit) ----
    # (O, I, Kh, Kw) -> (O, Kh, Kw, I) -> (O, 9, Cin) -> pad Cin -> (O, 9*Cin_pad)
    w_k = jnp.transpose(w_oihw, (0, 2, 3, 1)).reshape(C2, 9, Cin)
    w_k = jnp.pad(w_k, ((0, 0), (0, 0), (0, Cin_pad - Cin))).reshape(C2, 9 * Cin_pad)
    w_k = w_k.astype(jnp.bfloat16)

    s = gamma / jnp.sqrt(run_var + eps)
    scale = s.reshape(C2, 1).astype(jnp.float32)
    shift = ((b - run_mean) * s + beta).reshape(C2, 1).astype(jnp.float32)

    # ---- input layout plumbing: NCHW -> spatial zero-pad -> flatten rows ----
    x_pad = jnp.pad(x_nchw, ((0, 0), (0, 0), (1, 1), (1, 1)))        # (N, Cin, H+2, W+2)
    x_flat = x_pad.reshape(N, Cin, Lp)
    x_flat = jnp.pad(x_flat, ((0, 0), (0, Cin_pad - Cin), (0, L_in - Lp)))
    x_flat = x_flat.astype(jnp.bfloat16)

    # ---- batch blocking: big enough blocks, grid length >= 2 (v7x megacore) ----
    bytes_per_image = Cin_pad * L_in * 2 + Cout * Lout * 2
    Nb = _pick_batch_block(N, bytes_per_image)
    grid = (N // Nb,)

    out = pl.pallas_call(
        partial(convblock_kernel, alpha=alpha, H=H, W=W),
        out_shape=jax.ShapeDtypeStruct((N, Cout, Lout), jnp.bfloat16),
        grid=grid,
        in_specs=[
            pl.BlockSpec((Nb, Cin_pad, L_in), lambda n: (n, 0, 0)),
            pl.BlockSpec((C2, 9 * Cin_pad), lambda n: (0, 0)),   # resident weights
            pl.BlockSpec((C2, 1), lambda n: (0, 0)),
            pl.BlockSpec((C2, 1), lambda n: (0, 0)),
        ],
        out_specs=pl.BlockSpec((Nb, Cout, Lout), lambda n: (n, 0, 0)),
        scratch_shapes=[pltpu.VMEM((9 * Cin_pad, Lout), jnp.bfloat16)],
        compiler_params=pltpu.CompilerParams(dimension_semantics=("parallel",)),
    )(x_flat, w_k, scale, shift)

    # Drop the 2 garbage columns per row; reshape is already NCHW (no transpose).
    out = out.reshape(N, Cout, H, Wp)[:, :, :, :W]
    return out.astype(jnp.float32)


def conv_block_reference(x_nchw, w_oihw, b, gamma, beta, run_mean, run_var,
                         *, alpha=0.5, eps=1e-5):
    """Pure-JAX f32 reference (mirrors the PyTorch forward, eval-mode BN)."""
    y = jax.lax.conv_general_dilated(
        x_nchw, w_oihw, window_strides=(1, 1), padding=((1, 1), (1, 1)),
        dimension_numbers=('NCHW', 'OIHW', 'NCHW'))
    y = y + b.reshape(1, -1, 1, 1)
    y = (y - run_mean.reshape(1, -1, 1, 1)) / jnp.sqrt(run_var.reshape(1, -1, 1, 1) + eps)
    y = y * gamma.reshape(1, -1, 1, 1) + beta.reshape(1, -1, 1, 1)
    C2 = w_oihw.shape[0]
    Cout = C2 // 2
    v, g = y[:, :Cout], y[:, Cout:]
    return v * ((1.0 - alpha) + alpha * jax.nn.sigmoid(g))


if __name__ == "__main__":
    # Small shapes consistent with the module: CIFAR-like conv block.
    N, Cin, H, W = 2, 4, 16, 16
    Cout = 8                      # out_channels
    C2 = 2 * Cout                 # conv produces out_channels * 2
    alpha = 0.5

    key = jax.random.PRNGKey(0)
    k_x, k_w, k_b, k_g, k_be, k_m, k_v = jax.random.split(key, 7)

    x = jax.random.normal(k_x, (N, Cin, H, W), jnp.float32)
    w = jax.random.normal(k_w, (C2, Cin, 3, 3), jnp.float32) * 0.1   # PyTorch OIHW
    b = jax.random.normal(k_b, (C2,), jnp.float32) * 0.1
    gamma = 1.0 + 0.1 * jax.random.normal(k_g, (C2,), jnp.float32)
    beta = 0.1 * jax.random.normal(k_be, (C2,), jnp.float32)
    run_mean = 0.1 * jax.random.normal(k_m, (C2,), jnp.float32)
    run_var = jnp.abs(jax.random.normal(k_v, (C2,), jnp.float32)) + 0.5

    fwd = jax.jit(partial(conv_block_forward, alpha=alpha))
    out = jax.block_until_ready(fwd(x, w, b, gamma, beta, run_mean, run_var))
    ref = jax.block_until_ready(
        conv_block_reference(x, w, b, gamma, beta, run_mean, run_var, alpha=alpha))

    assert out.shape == (N, Cout, H, W), out.shape
    # bf16 MXU inputs + bf16 output store -> slightly looser tolerance vs. the
    # pure-f32 reference; BN/bias/gate math is f32.
    max_err = jnp.max(jnp.abs(out - ref))
    assert jnp.allclose(out, ref, atol=5e-2, rtol=5e-2), f"max abs err {max_err}"

    print("KERNEL_OK")
</pallas_src>

<mosaic_0001>
module attributes {stable_mosaic.version = 11 : i64} {
  func.func @convblock_kernel(%arg0: i32, %arg1: memref<1x8x384xbf16, #tpu.memory_space<vmem>>, %arg2: memref<16x72xbf16, #tpu.memory_space<vmem>>, %arg3: memref<16x1xf32, #tpu.memory_space<vmem>>, %arg4: memref<16x1xf32, #tpu.memory_space<vmem>>, %arg5: memref<1x8x288xbf16, #tpu.memory_space<vmem>>, %arg6: memref<72x288xbf16, #tpu.memory_space<vmem>>) attributes {dimension_semantics = [#tpu.dimension_semantics<parallel>], iteration_bounds = array<i64: 2>, scalar_prefetch = 0 : i64, scratch_operands = 1 : i64, tpu.core_type = #tpu.core_type<tc>, window_params = [{transform_indices = @transform_0, window_bounds = array<i64: 1, 8, 384>}, {pipeline_mode = #tpu.pipeline_mode<synchronous>, transform_indices = @transform_1, window_bounds = array<i64: 16, 72>}, {pipeline_mode = #tpu.pipeline_mode<synchronous>, transform_indices = @transform_2, window_bounds = array<i64: 16, 1>}, {pipeline_mode = #tpu.pipeline_mode<synchronous>, transform_indices = @transform_3, window_bounds = array<i64: 16, 1>}, {transform_indices = @transform_4, window_bounds = array<i64: 1, 8, 288>}]} {
    %c0 = arith.constant 0 : index
    %c0_0 = arith.constant 0 : index
    %c0_1 = arith.constant 0 : index
    %0 = vector.load %arg1[%c0, %c0_0, %c0_1] : memref<1x8x384xbf16, #tpu.memory_space<vmem>>, vector<1x8x288xbf16>
    %1 = vector.shape_cast %0 : vector<1x8x288xbf16> to vector<8x288xbf16>
    %c0_2 = arith.constant 0 : index
    %c0_3 = arith.constant 0 : index
    %2 = vector.load %arg6[%c0_2, %c0_3] : memref<72x288xbf16, #tpu.memory_space<vmem>>, vector<8x288xbf16>
    tpu.vector_store %arg6[%c0_2, %c0_3], %1 {strides = array<i32>} : memref<72x288xbf16, #tpu.memory_space<vmem>>, vector<8x288xbf16>,
    %c0_4 = arith.constant 0 : index
    %c0_5 = arith.constant 0 : index
    %c1 = arith.constant 1 : index
    %3 = vector.load %arg1[%c0_4, %c0_5, %c1] : memref<1x8x384xbf16, #tpu.memory_space<vmem>>, vector<1x8x288xbf16>
    %4 = vector.shape_cast %3 : vector<1x8x288xbf16> to vector<8x288xbf16>
    %c8 = arith.constant 8 : index
    %c0_6 = arith.constant 0 : index
    %5 = vector.load %arg6[%c8, %c0_6] : memref<72x288xbf16, #tpu.memory_space<vmem>>, vector<8x288xbf16>
    tpu.vector_store %arg6[%c8, %c0_6], %4 {strides = array<i32>} : memref<72x288xbf16, #tpu.memory_space<vmem>>, vector<8x288xbf16>,
    %c0_7 = arith.constant 0 : index
    %c0_8 = arith.constant 0 : index
    %c2 = arith.constant 2 : index
    %6 = vector.load %arg1[%c0_7, %c0_8, %c2] : memref<1x8x384xbf16, #tpu.memory_space<vmem>>, vector<1x8x288xbf16>
    %7 = vector.shape_cast %6 : vector<1x8x288xbf16> to vector<8x288xbf16>
    %c16 = arith.constant 16 : index
    %c0_9 = arith.constant 0 : index
    %8 = vector.load %arg6[%c16, %c0_9] : memref<72x288xbf16, #tpu.memory_space<vmem>>, vector<8x288xbf16>
    tpu.vector_store %arg6[%c16, %c0_9], %7 {strides = array<i32>} : memref<72x288xbf16, #tpu.memory_space<vmem>>, vector<8x288xbf16>,
    %c0_10 = arith.constant 0 : index
    %c0_11 = arith.constant 0 : index
    %c18 = arith.constant 18 : index
    %9 = vector.load %arg1[%c0_10, %c0_11, %c18] : memref<1x8x384xbf16, #tpu.memory_space<vmem>>, vector<1x8x288xbf16>
    %10 = vector.shape_cast %9 : vector<1x8x288xbf16> to vector<8x288xbf16>
    %c24 = arith.constant 24 : index
    %c0_12 = arith.constant 0 : index
    %11 = vector.load %arg6[%c24, %c0_12] : memref<72x288xbf16, #tpu.memory_space<vmem>>, vector<8x288xbf16>
    tpu.vector_store %arg6[%c24, %c0_12], %10 {strides = array<i32>} : memref<72x288xbf16, #tpu.memory_space<vmem>>, vector<8x288xbf16>,
    %c0_13 = arith.constant 0 : index
    %c0_14 = arith.constant 0 : index
    %c19 = arith.constant 19 : index
    %12 = vector.load %arg1[%c0_13, %c0_14, %c19] : memref<1x8x384xbf16, #tpu.memory_space<vmem>>, vector<1x8x288xbf16>
    %13 = vector.shape_cast %12 : vector<1x8x288xbf16> to vector<8x288xbf16>
    %c32 = arith.constant 32 : index
    %c0_15 = arith.constant 0 : index
    %14 = vector.load %arg6[%c32, %c0_15] : memref<72x288xbf16, #tpu.memory_space<vmem>>, vector<8x288xbf16>
    tpu.vector_store %arg6[%c32, %c0_15], %13 {strides = array<i32>} : memref<72x288xbf16, #tpu.memory_space<vmem>>, vector<8x288xbf16>,
    %c0_16 = arith.constant 0 : index
    %c0_17 = arith.constant 0 : index
    %c20 = arith.constant 20 : index
    %15 = vector.load %arg1[%c0_16, %c0_17, %c20] : memref<1x8x384xbf16, #tpu.memory_space<vmem>>, vector<1x8x288xbf16>
    %16 = vector.shape_cast %15 : vector<1x8x288xbf16> to vector<8x288xbf16>
    %c40 = arith.constant 40 : index
    %c0_18 = arith.constant 0 : index
    %17 = vector.load %arg6[%c40, %c0_18] : memref<72x288xbf16, #tpu.memory_space<vmem>>, vector<8x288xbf16>
    tpu.vector_store %arg6[%c40, %c0_18], %16 {strides = array<i32>} : memref<72x288xbf16, #tpu.memory_space<vmem>>, vector<8x288xbf16>,
    %c0_19 = arith.constant 0 : index
    %c0_20 = arith.constant 0 : index
    %c36 = arith.constant 36 : index
    %18 = vector.load %arg1[%c0_19, %c0_20, %c36] : memref<1x8x384xbf16, #tpu.memory_space<vmem>>, vector<1x8x288xbf16>
    %19 = vector.shape_cast %18 : vector<1x8x288xbf16> to vector<8x288xbf16>
    %c48 = arith.constant 48 : index
    %c0_21 = arith.constant 0 : index
    %20 = vector.load %arg6[%c48, %c0_21] : memref<72x288xbf16, #tpu.memory_space<vmem>>, vector<8x288xbf16>
    tpu.vector_store %arg6[%c48, %c0_21], %19 {strides = array<i32>} : memref<72x288xbf16, #tpu.memory_space<vmem>>, vector<8x288xbf16>,
    %c0_22 = arith.constant 0 : index
    %c0_23 = arith.constant 0 : index
    %c37 = arith.constant 37 : index
    %21 = vector.load %arg1[%c0_22, %c0_23, %c37] : memref<1x8x384xbf16, #tpu.memory_space<vmem>>, vector<1x8x288xbf16>
    %22 = vector.shape_cast %21 : vector<1x8x288xbf16> to vector<8x288xbf16>
    %c56 = arith.constant 56 : index
    %c0_24 = arith.constant 0 : index
    %23 = vector.load %arg6[%c56, %c0_24] : memref<72x288xbf16, #tpu.memory_space<vmem>>, vector<8x288xbf16>
    tpu.vector_store %arg6[%c56, %c0_24], %22 {strides = array<i32>} : memref<72x288xbf16, #tpu.memory_space<vmem>>, vector<8x288xbf16>,
    %c0_25 = arith.constant 0 : index
    %c0_26 = arith.constant 0 : index
    %c38 = arith.constant 38 : index
    %24 = vector.load %arg1[%c0_25, %c0_26, %c38] : memref<1x8x384xbf16, #tpu.memory_space<vmem>>, vector<1x8x288xbf16>
    %25 = vector.shape_cast %24 : vector<1x8x288xbf16> to vector<8x288xbf16>
    %c64 = arith.constant 64 : index
    %c0_27 = arith.constant 0 : index
    %26 = vector.load %arg6[%c64, %c0_27] : memref<72x288xbf16, #tpu.memory_space<vmem>>, vector<8x288xbf16>
    tpu.vector_store %arg6[%c64, %c0_27], %25 {strides = array<i32>} : memref<72x288xbf16, #tpu.memory_space<vmem>>, vector<8x288xbf16>,
    %c0_28 = arith.constant 0 : index
    %c0_29 = arith.constant 0 : index
    %27 = vector.load %arg2[%c0_28, %c0_29] : memref<16x72xbf16, #tpu.memory_space<vmem>>, vector<16x72xbf16>
    %c0_30 = arith.constant 0 : index
    %c0_31 = arith.constant 0 : index
    %28 = vector.load %arg6[%c0_30, %c0_31] : memref<72x288xbf16, #tpu.memory_space<vmem>>, vector<72x288xbf16>
    %cst = arith.constant dense<0.000000e+00> : vector<16x288xf32>
    %29 = tpu.matmul %27, %28, %cst {dimension_numbers = #tpu.dot_dimension_numbers<[1], [0], [0], [1], [0, 0, 1, 1], [], []>} : vector<16x72xbf16>, vector<72x288xbf16>, vector<16x288xf32> -> vector<16x288xf32>
    %c0_32 = arith.constant 0 : index
    %c0_33 = arith.constant 0 : index
    %30 = vector.load %arg3[%c0_32, %c0_33] : memref<16x1xf32, #tpu.memory_space<vmem>>, vector<16x1xf32>
    %31 = vector.broadcast %30 : vector<16x1xf32> to vector<16x288xf32>
    %32 = arith.mulf %29, %31 : vector<16x288xf32>
    %c0_34 = arith.constant 0 : index
    %c0_35 = arith.constant 0 : index
    %33 = vector.load %arg4[%c0_34, %c0_35] : memref<16x1xf32, #tpu.memory_space<vmem>>, vector<16x1xf32>
    %34 = vector.broadcast %33 : vector<16x1xf32> to vector<16x288xf32>
    %35 = arith.addf %32, %34 : vector<16x288xf32>
    %36 = vector.extract_strided_slice %35 {offsets = [0, 0], sizes = [8, 288], strides = [1, 1]} : vector<16x288xf32> to vector<8x288xf32>
    %37 = vector.extract_strided_slice %35 {offsets = [8, 0], sizes = [8, 288], strides = [1, 1]} : vector<16x288xf32> to vector<8x288xf32>
    %38 = arith.negf %37 : vector<8x288xf32>
    %39 = math.exp %38 : vector<8x288xf32>
    %cst_36 = arith.constant 1.000000e+00 : f32
    %40 = vector.broadcast %cst_36 : f32 to vector<8x288xf32>
    %41 = arith.addf %40, %39 : vector<8x288xf32>
    %42 = arith.divf %40, %41 : vector<8x288xf32>
    %cst_37 = arith.constant 5.000000e-01 : f32
    %43 = vector.broadcast %cst_37 : f32 to vector<8x288xf32>
    %44 = arith.mulf %43, %42 : vector<8x288xf32>
    %cst_38 = arith.constant 5.000000e-01 : f32
    %45 = vector.broadcast %cst_38 : f32 to vector<8x288xf32>
    %46 = arith.addf %45, %44 : vector<8x288xf32>
    %47 = arith.mulf %36, %46 : vector<8x288xf32>
    %48 = arith.truncf %47 : vector<8x288xf32> to vector<8x288xbf16>
    %c0_39 = arith.constant 0 : index
    %c0_40 = arith.constant 0 : index
    %c0_41 = arith.constant 0 : index
    %49 = vector.load %arg5[%c0_39, %c0_40, %c0_41] : memref<1x8x288xbf16, #tpu.memory_space<vmem>>, vector<1x8x288xbf16>
    %50 = vector.shape_cast %49 : vector<1x8x288xbf16> to vector<8x288xbf16>
    %51 = vector.shape_cast %48 : vector<8x288xbf16> to vector<1x8x288xbf16>
    tpu.vector_store %arg5[%c0_39, %c0_40, %c0_41], %51 {strides = array<i32>} : memref<1x8x288xbf16, #tpu.memory_space<vmem>>, vector<1x8x288xbf16>,
    return
  }
  func.func @transform_0(%arg0: i32) -> (i32, i32, i32) {
    %c0_i32 = arith.constant 0 : i32
    %c0_i32_0 = arith.constant 0 : i32
    %c0_i32_1 = arith.constant 0 : i32
    return %arg0, %c0_i32, %c0_i32_0 : i32, i32, i32
  }
  func.func @transform_1(%arg0: i32) -> (i32, i32) {
    %c0_i32 = arith.constant 0 : i32
    %c0_i32_0 = arith.constant 0 : i32
    %c0_i32_1 = arith.constant 0 : i32
    return %c0_i32, %c0_i32_0 : i32, i32
  }
  func.func @transform_2(%arg0: i32) -> (i32, i32) {
    %c0_i32 = arith.constant 0 : i32
    %c0_i32_0 = arith.constant 0 : i32
    %c0_i32_1 = arith.constant 0 : i32
    return %c0_i32, %c0_i32_0 : i32, i32
  }
  func.func @transform_3(%arg0: i32) -> (i32, i32) {
    %c0_i32 = arith.constant 0 : i32
    %c0_i32_0 = arith.constant 0 : i32
    %c0_i32_1 = arith.constant 0 : i32
    return %c0_i32, %c0_i32_0 : i32, i32
  }
  func.func @transform_4(%arg0: i32) -> (i32, i32, i32) {
    %c0_i32 = arith.constant 0 : i32
    %c0_i32_0 = arith.constant 0 : i32
    %c0_i32_1 = arith.constant 0 : i32
    return %arg0, %c0_i32, %c0_i32_0 : i32, i32, i32
  }
}

</mosaic_0001>

<bundles_post_ra>
// kernel: conv_block_forward.1
= control target key start
LH: loop header
LB: loop body
LE: loop exit
PB: predicated region body
PF: predicated region fallthrough
CT: control target
= control target key end

     0   :  { %s810_s15 = smov 0   ;;  %s905_s0 = inlined_call_operand.vmem [shape: bf16[2,8,384], index: 0, kind: input, shape index: {}]   ;;  %s906_s1 = inlined_call_operand.vmem [shape: bf16[16,72], index: 1, kind: input, shape index: {}]   ;;  %s907_s2 = inlined_call_operand.vmem [shape: f32[16,1], index: 2, kind: input, shape index: {}]   ;;  %s908_s3 = inlined_call_operand.vmem [shape: f32[16,1], index: 3, kind: input, shape index: {}]   ;;  %s909_s4 = inlined_call_operand.vmem [shape: bf16[2,8,288], index: 4, kind: output, shape index: {}]  }
   0x1 LB: > { %s655_s16 = sadd.s32 4294967295, %s774_s15   ;;  %p659_p0 = scmp.ge.s32.totalorder %s774_s15, 1  ;;  %s774_s15 = sphi %s810_s15, %s14_s15  }
   0x2   : > { %p162_p1 = scmp.lt.s32.totalorder %s774_s15, 3 }
   0x4   : > { %p163_p2 = pnand %p659_p0, %p162_p1 }
   0x5   : > { %p188_p3 = scmp.lt.s32.totalorder (!%p163_p2), %s655_s16, 1  ;;  %s776_s21 = smov (!%p163_p2), 90  }
   0x6   : > { %166 = sbr.rel (%p163_p2) target bundleno = 365 (0x16d), region = 36  ;;  %s777_s22 = smov (!%p163_p2), 92  }
   0x7   : > { %s778_s23 = smov (!%p163_p2), 91   ;;  %s779_s24 = smov (!%p163_p2), 108  }
   0x8   : > { %s780_s25 = smov (!%p163_p2), 109   ;;  %s781_s26 = smov (!%p163_p2), 126  }
   0x9   : > { %s782_s27 = smov (!%p163_p2), 110   ;;  %s783_s28 = smov (!%p163_p2), 127  }
   0xb   : > { %s911_s16 = smov (!%p188_p3, %s655_s16), 1  ;;  %vm202_vm0 = vcmask 257024   ;;  %vm214_vm1 = vcmask 1043456   ;;  %vm301_vm2 = vcmask 752640   ;;  %vm335_vm3 = vcmask 736256   ;;  %v495_v63 = vld [vmem:[%s907_s2 + $0x8] sm:$0xff] }
   0xc   : > { %s735_s17 = smul.u32 12, %s911_s16  ;;  %vm318_vm4 = vcmask 744448   ;;  %vm267_vm5 = vcmask 891904   ;;  %vm284_vm6 = vcmask 883712   ;;  %vm250_vm7 = vcmask 900096  }
   0xd   : > { %vm233_vm8 = vcmask 1031168   ;;  %vm438_vm9 = vcmask 588800   ;;  %vm216_vm10 = vcmask 1039360  }
   0xe   : > { %s826_s20 = scalar_lea.vmem %s905_s0, %s735_s17  ;;  %s895_s18 = scalar_lea.vmem %s909_s4, %s735_s17 }
   0xf   : > { %v325_v0 = vld [vmem:[%s826_s20 + $0x8] sm:$0xf]  ;;  %v324_v2 = vld [vmem:[%s826_s20] sm:$0xff] }
  0x10   : > { %v291_v1 = vld [vmem:[%s826_s20 + $0x8] sm:$0xf]  ;;  %330 = vrot.lane.b32.xlu0 %v325_v0, %s776_s21  ;;  %201 = vst [vmem:[#allocation2] sm:$0xff] %v324_v2  ;;  %294 = vrot.lane.b32.xlu2 %v324_v2, %s777_s22  ;;  %v494_v0 = vld [vmem:[%s907_s2] sm:$0xff] }
  0x11   : > { %296 = vrot.lane.b32.xlu1 %v291_v1, %s777_s22  ;;  %v308_v3 = vld [vmem:[%s826_s20 + $0x8] sm:$0xf] }
  0x12   : > { %v274_v4 = vld [vmem:[%s826_s20 + $0x8] sm:$0xf] }
  0x13   : > { %v257_v5 = vld [vmem:[%s826_s20 + $0x8] sm:$0xf] }
  0x14   : > { %v223_v6 = vld [vmem:[%s826_s20 + $0x8] sm:$0xf] }
  0x15   : > { %v240_v7 = vld [vmem:[%s826_s20 + $0x8] sm:$0xf] }
  0x16   : > { %v205_v8 = vld [vmem:[%s826_s20 + $0x8] sm:$0xf] }
  0x17   : > { %v200_v12 = vld [vmem:[%s826_s20 + $0x8] sm:$0xf] }
  0x18   : > { %328 = vrot.lane.b32.xlu0 %v324_v2, %s776_s21  ;;  %311 = vrot.lane.b32.xlu2 %v324_v2, %s778_s23  ;;  %203 = vst.msk [vmem:[#allocation2 + $0x8] sm:$0xf] %vm202_vm0, %v200_v12 }
  0x19   : > { %313 = vrot.lane.b32.xlu1 %v308_v3, %s778_s23  ;;  %v513_v3 = vld [vmem:[%s908_s3 + $0x8] sm:$0xff] }
  0x20   : > { %262 = vrot.lane.b32.xlu0 %v257_v5, %s780_s25  ;;  %260 = vrot.lane.b32.xlu2 %v324_v2, %s780_s25 }
  0x21   : > { %279 = vrot.lane.b32.xlu1 %v274_v4, %s779_s24 }
  0x28   : > { %277 = vrot.lane.b32.xlu0 %v324_v2, %s779_s24  ;;  %245 = vrot.lane.b32.xlu2 %v240_v7, %s782_s27 }
  0x29   : > { %228 = vrot.lane.b32.xlu1 %v223_v6, %s781_s26 }
  0x30   : > { %226 = vrot.lane.b32.xlu0 %v324_v2, %s781_s26  ;;  %210 = vrot.lane.b32.xlu2 %v205_v8, %s783_s28 }
  0x31   : > { %243 = vrot.lane.b32.xlu1 %v324_v2, %s782_s27 }
  0x38   : > { %208 = vrot.lane.b32.xlu0 %v324_v2, %s783_s28  ;;  %v784_v2 = vmov 0  }
  0x39   : > { %753 = vset.pattern.permute.xlu1 %v784_v2  ;;  %755 = vset.pattern.permute.xlu0 %v784_v2 }
  0x3a   : > { %503 = vperm.xlu1 %753, %v495_v63   ;;  %754 = vset.pattern.permute.xlu2 %v784_v2 }
  0x3b   : > { %521 = vperm.xlu2 %754, %v513_v3  }
  0x40   : > { %498 = vperm.xlu0 %755, %v494_v0  }
  0x6a   : > { %v295_v9 = vpop.permute.xlu2 %294 }
  0x6b   : > { %v298_v13 = vrot.slane %v295_v9, 4 }
  0x72   : > { %v312_v10 = vpop.permute.xlu2 %311 }
  0x73   : > { %v315_v20 = vrot.slane %v312_v10, 4 }
  0x7a   : > { %v261_v11 = vpop.permute.xlu2 %260 }
  0x7b   : > { %v264_v37 = vrot.slane %v261_v11, 4 }
  0x82   : > { %v331_v14 = vpop.permute.xlu0 %330  ;;  %v840_v17 = vpop.permute.xlu2 %245 }
  0x83   : > { %v297_v15 = vpop.permute.xlu1 %296  ;;  %340 = vst.msk [vmem:[#allocation2 + $0x68] sm:$0xf] %vm202_vm0, %v331_v14  ;;  %v333_v24 = vrot.slane %v331_v14, 4  ;;  %v248_v6 = vrot.slane %v840_v17, 4 }
  0x84   : > { %v299_v16 = vrot.slane %v297_v15, 4  ;;  %306 = vst.msk [vmem:[#allocation2 + $0x50] sm:$0xf] %vm202_vm0, %v297_v15 }
  0x85   : > { %255 = vst.msk [vmem:[#allocation2 + $0x2c] sm:$0xf] %vm202_vm0, %v840_v17 }
  0x86   : > { %v300_v18 = vsel %vm214_vm1, %v298_v13, %v299_v16  ;;  %v512_v16 = vld [vmem:[%s908_s3] sm:$0xff] }
  0x87   : > { %v302_v19 = vsel %vm301_vm2, %v295_v9, %v300_v18  ;;  %516 = vperm.xlu1 %753, %v512_v16  }
  0x88   : > { %305 = vst [vmem:[#allocation2 + $0x48] sm:$0xff] %v302_v19 }
  0x8a   : > { %v329_v21 = vpop.permute.xlu0 %328  ;;  %v360_v23 = vld [vmem:[#allocation2 + $0x68] sm:$0xf]  ;;  %v847_v28 = vpop.permute.xlu2 %210 }
  0x8b   : > { %v314_v22 = vpop.permute.xlu1 %313  ;;  %v332_v25 = vrot.slane %v329_v21, 4  ;;  %v410_v27 = vunpack.c.l.b16 %v360_v23  ;;  %221 = vst.msk [vmem:[#allocation2 + $0x14] sm:$0xf] %vm202_vm0, %v847_v28  ;;  %v712_v42 = vld [vmem:[#allocation2 + $0x50] sm:$0xf] }
  0x8c   : > { %v316_v26 = vrot.slane %v314_v22, 4  ;;  %323 = vst.msk [vmem:[#allocation2 + $0x5c] sm:$0xf] %vm202_vm0, %v314_v22  ;;  %v728_v5 = vld [vmem:[#allocation2 + $0x28] sm:$0xf0] }
  0x8d   : > { %v334_v29 = vsel %vm214_vm1, %v332_v25, %v333_v24  ;;  %v425_v31 = vpack.c.b16 %v410_v27, %v410_v27 }
  0x8e   : > { %v317_v30 = vsel %vm214_vm1, %v315_v20, %v316_v26  ;;  %v336_v32 = vsel %vm335_vm3, %v329_v21, %v334_v29  ;;  %v722_v29 = vld [vmem:[%s906_s1] sm:$0xff] }
  0x8f   : > { %v319_v33 = vsel %vm318_vm4, %v312_v10, %v317_v30  ;;  %v450_v34 = vsel %vm214_vm1, %v425_v31, 0  ;;  %v408_v35 = vunpack.c.l.b16 %v336_v32  ;;  %v409_v36 = vunpack.c.h.b16 %v336_v32  ;;  %v704_v50 = vld [vmem:[#allocation2 + $0x48] sm:$0xf]  ;;  %v732_v51 = vld [vmem:[#allocation2 + $0x4c] sm:$0xf] }
  0x90   : > { %322 = vst [vmem:[#allocation2 + $0x54] sm:$0xff] %v319_v33  ;;  %483 = vmatpush.bf16.msra.mxu2 %v450_v34  ;;  %v676_v10 = vld [vmem:[#allocation2 + $0x8] sm:$0xf]  ;;  %v213_v31 = vrot.slane %v847_v28, 4 }
  0x91   : > { %v423_v38 = vpack.c.b16 %v408_v35, %v408_v35  ;;  %v424_v39 = vpack.c.b16 %v409_v36, %v409_v36 }
  0x92   : > { %v263_v41 = vpop.permute.xlu0 %262  ;;  %v725_v15 = vld [vmem:[#allocation2 + $0x10] sm:$0xf0] }
  0x93   : > { %v280_v40 = vpop.permute.xlu1 %279  ;;  %v734_v43 = vld [vmem:[#allocation2 + $0x58] sm:$0xf0]  ;;  %v265_v44 = vrot.slane %v263_v41, 4  ;;  %v444_v46 = vsel %vm214_vm1, %v423_v38, 0  ;;  %272 = vst.msk [vmem:[#allocation2 + $0x38] sm:$0xf] %vm202_vm0, %v263_v41  ;;  %v677_v25 = vor.u32 %v725_v15, %v676_v10 }
  0x94   : > { %289 = vst.msk [vmem:[#allocation2 + $0x44] sm:$0xf] %vm202_vm0, %v280_v40  ;;  %v713_v45 = vor.u32 %v734_v43, %v712_v42  ;;  %455 = vmatpush.bf16.msra.mxu0 %v444_v46  ;;  %v447_v47 = vsel %vm214_vm1, %v424_v39, 0  ;;  %v282_v59 = vrot.slane %v280_v40, 4  ;;  %v668_v41 = vld [vmem:[#allocation2] sm:$0xf] }
  0x95   : > { %v266_v48 = vsel %vm214_vm1, %v264_v37, %v265_v44  ;;  %469 = vmatpush.bf16.msra.mxu1 %v447_v47  ;;  %v723_v42 = vld [vmem:[#allocation2 + $0x4] sm:$0xf] }
  0x96   : > { %484 = vmatpush.bf16.msra.mxu2 %v713_v45  ;;  %v268_v49 = vsel %vm267_vm5, %v261_v11, %v266_v48 }
  0x97   : > { %271 = vst [vmem:[#allocation2 + $0x30] sm:$0xff] %v268_v49  ;;  %v733_v52 = vld [vmem:[#allocation2 + $0x50] sm:$0xf0]  ;;  %v706_v53 = vld [vmem:[#allocation2 + $0x54] sm:$0xf0]  ;;  %v522_v49 = vpop.permute.xlu2 %521 }
  0x98   : > { %v705_v54 = vor.u32 %v733_v52, %v704_v50  ;;  %v709_v55 = vor.u32 %v732_v51, %v706_v53 }
  0x9a   : > { %v278_v56 = vpop.permute.xlu0 %277  ;;  %456 = vmatpush.bf16.msra.mxu0 %v705_v54  ;;  %470 = vmatpush.bf16.msra.mxu1 %v709_v55  ;;  %v700_v61 = vld [vmem:[#allocation2 + $0x38] sm:$0xf] }
  0x9b   : > { %v229_v57 = vpop.permute.xlu1 %228  ;;  %v731_v58 = vld [vmem:[#allocation2 + $0x40] sm:$0xf0]  ;;  %v281_v60 = vrot.slane %v278_v56, 4 }
  0x9c   : > { %238 = vst.msk [vmem:[#allocation2 + $0x20] sm:$0xf] %vm202_vm0, %v229_v57  ;;  %v701_v62 = vor.u32 %v731_v58, %v700_v61  ;;  %v231_v11 = vrot.slane %v229_v57, 4 }
  0x9d   : > { %v283_v1 = vsel %vm214_vm1, %v281_v60, %v282_v59 }
  0x9e   : > { %v285_v4 = vsel %vm284_vm6, %v278_v56, %v283_v1  ;;  %485 = vmatpush.bf16.msra.mxu2 %v701_v62  ;;  %v692_v17 = vld [vmem:[#allocation2 + $0x30] sm:$0xf]  ;;  %v729_v23 = vld [vmem:[#allocation2 + $0x34] sm:$0xf] }
  0x9f   : > { %288 = vst [vmem:[#allocation2 + $0x3c] sm:$0xff] %v285_v4 }
  0xa2   : > { %v227_v8 = vpop.permute.xlu0 %226 }
  0xa3   : > { %v244_v7 = vpop.permute.xlu1 %243  ;;  %v688_v9 = vld [vmem:[#allocation2 + $0x20] sm:$0xf]  ;;  %v230_v13 = vrot.slane %v227_v8, 4 }
  0xa4   : > { %v247_v12 = vrot.slane %v244_v7, 4  ;;  %v689_v14 = vor.u32 %v728_v5, %v688_v9 }
  0xa5   : > { %v232_v19 = vsel %vm214_vm1, %v230_v13, %v231_v11 }
  0xa6   : > { %v249_v18 = vsel %vm214_vm1, %v247_v12, %v248_v6  ;;  %486 = vmatpush.bf16.msra.mxu2 %v689_v14  ;;  %v234_v21 = vsel %vm233_vm8, %v227_v8, %v232_v19  ;;  %v730_v22 = vld [vmem:[#allocation2 + $0x38] sm:$0xf0]  ;;  %v694_v24 = vld [vmem:[#allocation2 + $0x3c] sm:$0xf0] }
  0xa7   : > { %v251_v20 = vsel %vm250_vm7, %v244_v7, %v249_v18  ;;  %v693_v26 = vor.u32 %v730_v22, %v692_v17  ;;  %v697_v27 = vor.u32 %v729_v23, %v694_v24  ;;  %237 = vst [vmem:[#allocation2 + $0x18] sm:$0xff] %v234_v21 }
  0xa8   : > { %254 = vst [vmem:[#allocation2 + $0x24] sm:$0xff] %v251_v20 }
  0xa9   : > { %457 = vmatpush.bf16.msra.mxu0 %v693_v26  ;;  %471 = vmatpush.bf16.msra.mxu1 %v697_v27 }
  0xaa   : > { %487 = vmatpush.bf16.msra.mxu2 %v677_v25  ;;  %v209_v30 = vpop.permute.xlu0 %208 }
  0xab   : > { %v212_v32 = vrot.slane %v209_v30, 4 }
  0xac   : > { %v504_v47 = vpop.permute.xlu1 %503 }
  0xad   : > { %v215_v33 = vsel %vm214_vm1, %v212_v32, %v213_v31  ;;  %716 = vmatmul.msk.bf16.vlgmr.msra.gmra.mxu2 %vm438_vm9, %v722_v29 }
  0xae   : > { %v217_v34 = vsel %vm216_vm10, %v209_v30, %v215_v33  ;;  %v680_v37 = vld [vmem:[#allocation2 + $0x18] sm:$0xf]  ;;  %v726_v38 = vld [vmem:[#allocation2 + $0x1c] sm:$0xf] }
  0xaf   : > { %v727_v35 = vld [vmem:[#allocation2 + $0x20] sm:$0xf0]  ;;  %v682_v36 = vld [vmem:[#allocation2 + $0x24] sm:$0xf0]  ;;  %220 = vst [vmem:[#allocation2 + $0xc] sm:$0xff] %v217_v34 }
  0xb0   : > { %v681_v39 = vor.u32 %v727_v35, %v680_v37  ;;  %v685_v40 = vor.u32 %v726_v38, %v682_v36 }
  0xb2   : > { %458 = vmatpush.bf16.msra.mxu0 %v681_v39  ;;  %472 = vmatpush.bf16.msra.mxu1 %v685_v40  ;;  %v499_v11 = vpop.permute.xlu0 %498 }
  0xb6   : > { %v724_v43 = vld [vmem:[#allocation2 + $0x8] sm:$0xf0]  ;;  %v670_v28 = vld [vmem:[#allocation2 + $0xc] sm:$0xf0] }
  0xb7   : > { %v669_v44 = vor.u32 %v724_v43, %v668_v41  ;;  %v673_v45 = vor.u32 %v723_v42, %v670_v28 }
  0xb9   : > { %459 = vmatpush.bf16.msra.mxu0 %v669_v44  ;;  %473 = vmatpush.bf16.msra.mxu1 %v673_v45 }
  0xbc   : > { %714 = vmatmul.msk.bf16.vlgmr.msra.gmra.mxu0 %vm438_vm9, %v722_v29  ;;  %715 = vmatmul.msk.bf16.vlgmr.msra.gmra.mxu1 %vm438_vm9, %v722_v29 }
  0xf9   : > { %v517_v18 = vpop.permute.xlu1 %516 }
 0x130   : > { %v489_v46 = vpop.f32.mrf.mxu2 }
 0x131   : > { %v508_v14 = vmul.f32 %v499_v11, %v489_v46 }
 0x133   : > { %v526_v23 = vadd.f32 %v517_v18, %v508_v14 }
 0x138   : > { %v491_v48 = vpop.f32.mrf.mxu2 }
 0x139   : > { %v511_v50 = vmul.f32 %v504_v47, %v491_v48  ;;  %v886_v51 = vpop.f32.mrf.mxu0  ;;  %v888_v52 = vpop.f32.mrf.mxu1 }
 0x13a   : > { %v506_v39 = vmul.f32 %v499_v11, %v886_v51  ;;  %v507_v42 = vmul.f32 %v499_v11, %v888_v52 }
 0x13b   : > { %v529_v53 = vadd.f32 %v522_v49, %v511_v50 }
 0x13d   : > { %v719_v54 = vmul.f32 -1.442695, %v529_v53 }
 0x13f   : > { %756 = vpow2.f32 %v719_v54 }
 0x141   : > { %v463_v55 = vpop.f32.mrf.mxu0  ;;  %v477_v56 = vpop.f32.mrf.mxu1 }
 0x142   : > { %v509_v57 = vmul.f32 %v504_v47, %v463_v55  ;;  %v510_v58 = vmul.f32 %v504_v47, %v477_v56  ;;  %v524_v47 = vadd.f32 %v517_v18, %v506_v39 }
 0x144   : > { %v527_v59 = vadd.f32 %v522_v49, %v509_v57  ;;  %v528_v60 = vadd.f32 %v522_v49, %v510_v58  ;;  %v525_v49 = vadd.f32 %v517_v18, %v507_v42 }
 0x145   : > { %v757_v61 = vpop.eup %756 }
 0x146   : > { %v541_v62 = vadd.f32 1.0, %v757_v61  ;;  %v717_v63 = vmul.f32 -1.442695, %v527_v59  ;;  %v718_v0 = vmul.f32 -1.442695, %v528_v60 }
 0x148   : > { %758 = vrcp.f32 %v541_v62  ;;  %v583_v8 = vand.u32 2147483648, %v541_v62  ;;  %v581_v10 = vand.u32 2147483647, %v541_v62  ;;  %vm577_vm12 = vweird.f32 %v541_v62 }
 0x149   : > { %760 = vpow2.f32 %v717_v63 }
 0x14a   : > { %762 = vpow2.f32 %v718_v0  ;;  %v584_v13 = vor.u32 1.1754944e-38, %v583_v8  ;;  %vm582_vm14 = vcmp.eq.f32.partialorder %v581_v10, 8.507059e+37 }
 0x14e   : > { %v759_v1 = vpop.eup %758 }
 0x14f   : > { %v761_v2 = vpop.eup %760  ;;  %v573_v3 = vmul.f32 %v759_v1, %v541_v62  ;;  %vm578_vm11 = vweird.f32 %v759_v1 }
 0x150   : > { %v763_v4 = vpop.eup %762  ;;  %v539_v5 = vadd.f32 1.0, %v761_v2  ;;  %vm579_vm13 = vmor %vm577_vm12, %vm578_vm11 }
 0x151   : > { %v574_v6 = vsub.f32 1.0, %v573_v3  ;;  %v540_v7 = vadd.f32 1.0, %v763_v4 }
 0x152   : > { %764 = vrcp.f32 %v539_v5  ;;  %v551_v26 = vand.u32 2147483647, %v539_v5  ;;  %v553_v27 = vand.u32 2147483648, %v539_v5  ;;  %vm547_vm2 = vweird.f32 %v539_v5 }
 0x153   : > { %v575_v9 = vmul.f32 %v759_v1, %v574_v6  ;;  %766 = vrcp.f32 %v540_v7  ;;  %v568_v32 = vand.u32 2147483648, %v540_v7  ;;  %v566_v34 = vand.u32 2147483647, %v540_v7 }
 0x154   : > { %v554_v37 = vor.u32 1.1754944e-38, %v553_v27  ;;  %vm562_vm4 = vweird.f32 %v540_v7  ;;  %vm552_vm5 = vcmp.eq.f32.partialorder %v551_v26, 8.507059e+37 }
 0x155   : > { %v576_v12 = vadd.f32 %v759_v1, %v575_v9  ;;  %v569_v41 = vor.u32 1.1754944e-38, %v568_v32  ;;  %vm567_vm7 = vcmp.eq.f32.partialorder %v566_v34, 8.507059e+37 }
 0x157   : > { %v580_v15 = vsel %vm579_vm13, %v759_v1, %v576_v12 }
 0x158   : > { %v765_v16 = vpop.eup %764  ;;  %v585_v19 = vsel %vm582_vm14, %v584_v13, %v580_v15 }
 0x159   : > { %v767_v17 = vpop.eup %766  ;;  %v589_v20 = vmul.f32 0.5, %v585_v19  ;;  %v543_v21 = vmul.f32 %v765_v16, %v539_v5  ;;  %vm548_vm15 = vweird.f32 %v765_v16 }
 0x15a   : > { %v558_v22 = vmul.f32 %v767_v17, %v540_v7  ;;  %vm563_vm1 = vweird.f32 %v767_v17  ;;  %vm549_vm3 = vmor %vm547_vm2, %vm548_vm15 }
 0x15b   : > { %v592_v24 = vadd.f32 0.5, %v589_v20  ;;  %v544_v25 = vsub.f32 1.0, %v543_v21  ;;  %vm564_vm6 = vmor %vm562_vm4, %vm563_vm1 }
 0x15c   : > { %v559_v29 = vsub.f32 1.0, %v558_v22 }
 0x15d   : > { %v595_v30 = vmul.f32 %v592_v24, %v526_v23  ;;  %v545_v31 = vmul.f32 %v765_v16, %v544_v25 }
 0x15e   : > { %v560_v33 = vmul.f32 %v767_v17, %v559_v29 }
 0x15f   : > { %v597_v35 = vpack.c.bf16 %v595_v30, %v595_v30  ;;  %v546_v36 = vadd.f32 %v765_v16, %v545_v31 }
 0x160   : > { %v561_v38 = vadd.f32 %v767_v17, %v560_v33 }
 0x161   : > { %599 = vst.msk [vmem:[%s895_s18 + $0x8] sm:$0xf] %vm202_vm0, %v597_v35  ;;  %v550_v40 = vsel %vm549_vm3, %v765_v16, %v546_v36 }
 0x162   : > { %v555_v43 = vsel %vm552_vm5, %v554_v37, %v550_v40  ;;  %v565_v28 = vsel %vm564_vm6, %v767_v17, %v561_v38 }
 0x163   : > { %v587_v44 = vmul.f32 0.5, %v555_v43  ;;  %v570_v45 = vsel %vm567_vm7, %v569_v41, %v565_v28 }
 0x164   : > { %v588_v46 = vmul.f32 0.5, %v570_v45 }
 0x165   : > { %v590_v48 = vadd.f32 0.5, %v587_v44 }
 0x166   : > { %v591_v50 = vadd.f32 0.5, %v588_v46 }
 0x167   : > { %v593_v51 = vmul.f32 %v590_v48, %v524_v47 }
 0x168   : > { %v594_v53 = vmul.f32 %v591_v50, %v525_v49 }
 0x16a   : > { %v596_v54 = vpack.c.bf16 %v594_v53, %v593_v51 }
 0x16c   : > { %598 = vst [vmem:[%s895_s18] sm:$0xff] %v596_v54 }
 0x16d PF: > { %s14_s15 = sadd.s32 1, %s774_s15  }
 0x16e   : > { %p11_p4 = scmp.ge.s32.totalorder %s14_s15, 4  }
 0x170   :  { %13 = sbr.rel (!%p11_p4) target bundleno = 1 (0x1), region = 66 }

</bundles_post_ra>
